<compile_context>
chip_gen: v5e
topology: v5e:2x2
jax: 0.10.0
libtpu: 0.0.40
codegen_flags: <defaults>
</compile_context>

<pallas_src>
import math

import jax
import jax.numpy as jnp
from jax.experimental import pallas as pl
from jax.experimental.pallas import tpu as pltpu


def _round_up(n: int, m: int) -> int:
    return (n + m - 1) // m * m


def _vmem_capacity_bytes() -> int:
    # Generation-aware VMEM cap (128 MiB on v5e/v6e, 64 MiB per-TC on v7x).
    try:
        cap = int(pltpu.get_tpu_info().vmem_capacity_bytes)
        if cap > 0:
            return cap
    except Exception:
        pass
    return 64 << 20  # conservative fallback, safe on every generation


def _resident_weight_spec(shape, index_map):
    # Constant-index-map blocks never refill their second buffer; ask for a
    # single buffer.  Fall back gracefully if pipeline_mode is unavailable.
    try:
        return pl.BlockSpec(shape, index_map, pipeline_mode=pl.Buffered(1))
    except TypeError:
        return pl.BlockSpec(shape, index_map)


# ----------------------------- Pallas kernels -------------------------------

def _mlp_resident_kernel(x_ref, w1t_ref, b1_ref, w2t_ref, b2_ref, o_ref):
    # x_ref:   (TB, DinA)  bf16
    # w1t_ref: (DinA, HP)  bf16      b1_ref: (1, HP)  f32
    # w2t_ref: (HP, OP)    bf16      b2_ref: (1, OP)  f32
    # o_ref:   (TB, OP)    bf16   (lane-dense: OP multiple of 128)
    h = jnp.dot(x_ref[...], w1t_ref[...], preferred_element_type=jnp.float32)
    # f32 epilogue (bias + ReLU); safe on v5e which has no bf16 VPU datapath.
    h = jnp.maximum(h + b1_ref[...], 0.0)
    out = jnp.dot(h.astype(jnp.bfloat16), w2t_ref[...],
                  preferred_element_type=jnp.float32)
    o_ref[...] = (out + b2_ref[...]).astype(o_ref.dtype)


def _mlp_tiled_kernel(x_ref, w1t_ref, b1_ref, w2t_ref, b2_ref, o_ref, acc_ref):
    # Hidden-dim tiled variant: grid = (batch tiles, HP // TK).  Keeps only a
    # (DinA, TK) W1^T chunk, (TK, OP) W2^T chunk and (TB, TK) hidden slab live.
    # ReLU is elementwise over H, so chunking H commutes with the final sum.
    k = pl.program_id(1)

    @pl.when(k == 0)
    def _():
        acc_ref[...] = jnp.zeros_like(acc_ref)

    h = jnp.dot(x_ref[...], w1t_ref[...], preferred_element_type=jnp.float32)
    h = jnp.maximum(h + b1_ref[...], 0.0)
    acc_ref[...] += jnp.dot(h.astype(jnp.bfloat16), w2t_ref[...],
                            preferred_element_type=jnp.float32)

    @pl.when(k == pl.num_programs(1) - 1)
    def _():
        o_ref[...] = (acc_ref[...] + b2_ref[...]).astype(o_ref.dtype)


# ------------------------------ pallas_call wrappers ------------------------

def _resident_need_bytes(tb, dina, hp, op):
    need = 2 * tb * dina * 2            # x tile, double-buffered, bf16
    need += 2 * tb * op * 2             # out tile, double-buffered, bf16
    need += (dina * hp + hp * op) * 2   # resident weights, single buffer, bf16
    need += (hp + op) * 4               # resident biases, single buffer, f32
    need += tb * hp * (4 + 2)           # hidden slab f32 + bf16 recast scratch
    need += 2 << 20                     # headroom
    return need


def mlp_forward_resident(xp, w1t, b1, w2t, b2, *, tb, vmem_cap):
    Bp, DinA = xp.shape
    HP = w1t.shape[1]
    OP = w2t.shape[1]
    assert Bp % tb == 0 and tb % 8 == 0
    assert HP % 128 == 0 and OP % 128 == 0

    need = _resident_need_bytes(tb, DinA, HP, OP)
    vmem_limit = int(min(max(need, 8 << 20), vmem_cap))

    return pl.pallas_call(
        _mlp_resident_kernel,
        out_shape=jax.ShapeDtypeStruct((Bp, OP), jnp.bfloat16),
        grid_spec=pltpu.PrefetchScalarGridSpec(
            num_scalar_prefetch=0,
            grid=(Bp // tb,),
            in_specs=[
                pl.BlockSpec((tb, DinA), lambda i: (i, 0)),        # x tile
                _resident_weight_spec((DinA, HP), lambda i: (0, 0)),  # W1^T
                _resident_weight_spec((1, HP), lambda i: (0, 0)),      # b1
                _resident_weight_spec((HP, OP), lambda i: (0, 0)),     # W2^T
                _resident_weight_spec((1, OP), lambda i: (0, 0)),      # b2
            ],
            out_specs=pl.BlockSpec((tb, OP), lambda i: (i, 0)),
        ),
        compiler_params=pltpu.CompilerParams(
            dimension_semantics=("parallel",),
            vmem_limit_bytes=vmem_limit),
    )(xp, w1t, b1, w2t, b2)


def mlp_forward_tiled(xp, w1t, b1, w2t, b2, *, tb, tk, vmem_cap):
    Bp, DinA = xp.shape
    HP = w1t.shape[1]
    OP = w2t.shape[1]
    assert Bp % tb == 0 and tb % 8 == 0
    assert HP % tk == 0 and tk % 128 == 0 and OP % 128 == 0

    need = (2 * tb * DinA * 2        # x
            + 2 * DinA * tk * 2      # W1^T chunk
            + 2 * tk * 4             # b1 chunk
            + 2 * tk * OP * 2        # W2^T chunk
            + 2 * OP * 4             # b2
            + 2 * tb * OP * 2        # out
            + tb * OP * 4            # f32 accumulator scratch
            + tb * tk * (4 + 2)      # hidden slab f32 + bf16 recast
            + (2 << 20))             # headroom
    vmem_limit = int(min(max(need, 8 << 20), vmem_cap))

    return pl.pallas_call(
        _mlp_tiled_kernel,
        out_shape=jax.ShapeDtypeStruct((Bp, OP), jnp.bfloat16),
        grid_spec=pltpu.PrefetchScalarGridSpec(
            num_scalar_prefetch=0,
            grid=(Bp // tb, HP // tk),
            in_specs=[
                pl.BlockSpec((tb, DinA), lambda i, k: (i, 0)),   # x (reused over k)
                pl.BlockSpec((DinA, tk), lambda i, k: (0, k)),   # W1^T chunk
                pl.BlockSpec((1, tk), lambda i, k: (0, k)),      # b1 chunk
                pl.BlockSpec((tk, OP), lambda i, k: (k, 0)),     # W2^T chunk
                pl.BlockSpec((1, OP), lambda i, k: (0, 0)),      # b2
            ],
            out_specs=pl.BlockSpec((tb, OP), lambda i, k: (i, 0)),
            scratch_shapes=[pltpu.VMEM((tb, OP), jnp.float32)],
        ),
        compiler_params=pltpu.CompilerParams(
            dimension_semantics=("parallel", "arbitrary"),
            vmem_limit_bytes=vmem_limit),
    )(xp, w1t, b1, w2t, b2)


# --------------------------- ReparamModule (JAX) ----------------------------

class ReparamMLP:
    """JAX equivalent of ReparamModule(MLP(Din, H, O)) forward path."""

    def __init__(self, d_in, d_hidden, d_out):
        self.d_in, self.d_h, self.d_out = d_in, d_hidden, d_out
        # Contraction dim only 8-aligned (no 128-pad of x in HBM); output-facing
        # dims lane-dense (multiples of 128).
        self.d_in_a = _round_up(d_in, 8)
        self.d_h_p = _round_up(d_hidden, 128)
        self.d_out_p = _round_up(d_out, 128)
        # Same bookkeeping ReparamModule.__init__ builds from named_parameters():
        # (module_name, param_name), numels, shapes - in registration order.
        self._param_infos = (("module.fc1", "weight"), ("module.fc1", "bias"),
                             ("module.fc2", "weight"), ("module.fc2", "bias"))
        self._param_shapes = ((d_hidden, d_in), (d_hidden,),
                              (d_out, d_hidden), (d_out,))
        self._param_numels = tuple(int(math.prod(s)) for s in self._param_shapes)
        self.param_numel = sum(self._param_numels)

    # ------------------------------------------------------------------ init
    def init_flat_param(self, key):
        # Deterministic synthetic init (stand-in for nn.Linear's init).
        parts = []
        for shape in self._param_shapes:
            key, sub = jax.random.split(key)
            parts.append(jax.random.normal(sub, shape, jnp.float32).reshape(-1) * 0.05)
        return jnp.concatenate(parts, axis=0)

    # ----------------------------------------------------------- unflatten
    def _unflatten_param(self, flat_param):
        # Equivalent of flat_param.split(self._param_numels) + .view(shape).
        ps, off = [], 0
        for numel, shape in zip(self._param_numels, self._param_shapes):
            ps.append(jax.lax.dynamic_slice_in_dim(flat_param, off, numel).reshape(shape))
            off += numel
        return ps

    def prepare_params(self, flat_param):
        """Squeeze + unflatten flat_param, then transpose / zero-pad / cast the
        weights ONCE (hoisted out of the per-batch hot path)."""
        flat_param = jnp.squeeze(flat_param)               # torch.squeeze(flat_param)
        w1, b1, w2, b2 = self._unflatten_param(flat_param)
        w1t = jnp.pad(w1.T.astype(jnp.bfloat16),
                      ((0, self.d_in_a - self.d_in), (0, self.d_h_p - self.d_h)))
        b1p = jnp.pad(b1.astype(jnp.float32), (0, self.d_h_p - self.d_h)).reshape(1, -1)
        w2t = jnp.pad(w2.T.astype(jnp.bfloat16),
                      ((0, self.d_h_p - self.d_h), (0, self.d_out_p - self.d_out)))
        b2p = jnp.pad(b2.astype(jnp.float32), (0, self.d_out_p - self.d_out)).reshape(1, -1)
        return (w1t, b1p, w2t, b2p)

    # --------------------------------------------------------- tile choices
    def _choose_tb(self, b8, vmem_cap):
        # Bigger tiles on 128 MiB parts (v5e/v6e); 256 default elsewhere (v7x).
        max_tb = 512 if vmem_cap >= (100 << 20) else 256
        max_tb = min(max_tb, b8)
        best = 8
        for tb in range(8, max_tb + 1, 8):
            bp = _round_up(b8, tb)
            if (bp - b8) / bp > 0.125:        # tail-padding waste cap
                continue
            if b8 >= 256 and bp // tb < 2:    # keep >=2 steps for 2-TC sharding
                continue
            best = tb
        return best

    def _weights_fit_resident(self, tb, vmem_cap):
        need = _resident_need_bytes(tb, self.d_in_a, self.d_h_p, self.d_out_p)
        return need <= int(0.75 * vmem_cap)

    # -------------------------------------------------------------- forward
    def forward(self, x, flat_param=None, *, prepared=None, force_tiled=False):
        """x: (B, d_in) f32. Pass either flat_param (possibly with a leading
        singleton dim, as PAD does) or a pre-built `prepared` tuple."""
        if prepared is None:
            prepared = self.prepare_params(flat_param)
        w1t, b1p, w2t, b2p = prepared

        vmem_cap = _vmem_capacity_bytes()
        B = x.shape[0]
        b8 = _round_up(B, 8)
        tb = self._choose_tb(b8, vmem_cap)
        bp = _round_up(b8, tb)
        # Batch pad + 8-aligned Din pad only; cast activations to bf16 for MXU.
        xp = jnp.pad(x.astype(jnp.bfloat16),
                     ((0, bp - B), (0, self.d_in_a - self.d_in)))

        use_tiled = force_tiled or not self._weights_fit_resident(tb, vmem_cap)
        if use_tiled:
            tk = next(t for t in (512, 256, 128) if self.d_h_p % t == 0)
            out_p = mlp_forward_tiled(xp, w1t, b1p, w2t, b2p,
                                      tb=tb, tk=tk, vmem_cap=vmem_cap)
        else:
            out_p = mlp_forward_resident(xp, w1t, b1p, w2t, b2p,
                                         tb=tb, vmem_cap=vmem_cap)
        # Slice the lane/batch padding back off; return in the input dtype.
        return out_p[:B, :self.d_out].astype(x.dtype)


# --------------------------------- main --------------------------------------

if __name__ == "__main__":
    B, DIN, H, O = 16, 32, 64, 16

    model = ReparamMLP(DIN, H, O)

    key = jax.random.PRNGKey(0)
    key_p, key_x = jax.random.split(key)
    flat_param = model.init_flat_param(key_p)          # shape (param_numel,)
    # Emulate how PAD passes flat_param with a leading singleton dim
    # (forward squeezes it).
    flat_param_in = flat_param[None, :]
    x = jax.random.normal(key_x, (B, DIN), jnp.float32)

    # Hoisted param prep (transpose/pad/bf16-cast once), then the kernel.
    prepared = model.prepare_params(flat_param_in)
    out = jax.block_until_ready(model.forward(x, prepared=prepared))
    # Also exercise the hidden-dim-tiled fallback path (used on v7x / large H).
    out_tiled = jax.block_until_ready(
        model.forward(x, prepared=prepared, force_tiled=True))

    # Reference check in plain JAX f32 (same unflattening semantics as the
    # original module).  Tolerance accounts for bf16 matmul inputs / bf16
    # output with f32 accumulation inside the kernel.
    w1, b1, w2, b2 = model._unflatten_param(jnp.squeeze(flat_param_in))
    ref = jnp.maximum(x @ w1.T + b1, 0.0) @ w2.T + b2
    assert out.shape == (B, O)
    assert jnp.allclose(out, ref, atol=5e-2, rtol=5e-2), \
        float(jnp.max(jnp.abs(out - ref)))
    assert jnp.allclose(out_tiled, ref, atol=5e-2, rtol=5e-2), \
        float(jnp.max(jnp.abs(out_tiled - ref)))

    print("KERNEL_OK")
</pallas_src>

<mosaic_0001>
module attributes {stable_mosaic.version = 11 : i64} {
  func.func @_mlp_resident_kernel(%arg0: i32, %arg1: memref<16x32xbf16, #tpu.memory_space<vmem>>, %arg2: memref<32x128xbf16, #tpu.memory_space<vmem>>, %arg3: memref<1x128xf32, #tpu.memory_space<vmem>>, %arg4: memref<128x128xbf16, #tpu.memory_space<vmem>>, %arg5: memref<1x128xf32, #tpu.memory_space<vmem>>, %arg6: memref<16x128xbf16, #tpu.memory_space<vmem>>) attributes {dimension_semantics = [#tpu.dimension_semantics<parallel>], iteration_bounds = array<i64: 1>, scalar_prefetch = 0 : i64, scratch_operands = 0 : i64, tpu.core_type = #tpu.core_type<tc>, window_params = [{transform_indices = @transform_0, window_bounds = array<i64: 16, 32>}, {pipeline_mode = #tpu.pipeline_mode<synchronous>, transform_indices = @transform_1, window_bounds = array<i64: 32, 128>}, {pipeline_mode = #tpu.pipeline_mode<synchronous>, transform_indices = @transform_2, window_bounds = array<i64: 1, 128>}, {pipeline_mode = #tpu.pipeline_mode<synchronous>, transform_indices = @transform_3, window_bounds = array<i64: 128, 128>}, {pipeline_mode = #tpu.pipeline_mode<synchronous>, transform_indices = @transform_4, window_bounds = array<i64: 1, 128>}, {transform_indices = @transform_5, window_bounds = array<i64: 16, 128>}]} {
    %c0 = arith.constant 0 : index
    %c0_0 = arith.constant 0 : index
    %0 = vector.load %arg1[%c0, %c0_0] : memref<16x32xbf16, #tpu.memory_space<vmem>>, vector<16x32xbf16>
    %c0_1 = arith.constant 0 : index
    %c0_2 = arith.constant 0 : index
    %1 = vector.load %arg2[%c0_1, %c0_2] : memref<32x128xbf16, #tpu.memory_space<vmem>>, vector<32x128xbf16>
    %cst = arith.constant dense<0.000000e+00> : vector<16x128xf32>
    %2 = tpu.matmul %0, %1, %cst {dimension_numbers = #tpu.dot_dimension_numbers<[1], [0], [0], [1], [0, 0, 1, 1], [], []>} : vector<16x32xbf16>, vector<32x128xbf16>, vector<16x128xf32> -> vector<16x128xf32>
    %c0_3 = arith.constant 0 : index
    %c0_4 = arith.constant 0 : index
    %3 = vector.load %arg3[%c0_3, %c0_4] : memref<1x128xf32, #tpu.memory_space<vmem>>, vector<1x128xf32>
    %4 = vector.broadcast %3 : vector<1x128xf32> to vector<16x128xf32>
    %5 = arith.addf %2, %4 : vector<16x128xf32>
    %cst_5 = arith.constant 0.000000e+00 : f32
    %6 = vector.broadcast %cst_5 : f32 to vector<16x128xf32>
    %7 = arith.maximumf %5, %6 : vector<16x128xf32>
    %8 = arith.truncf %7 : vector<16x128xf32> to vector<16x128xbf16>
    %c0_6 = arith.constant 0 : index
    %c0_7 = arith.constant 0 : index
    %9 = vector.load %arg4[%c0_6, %c0_7] : memref<128x128xbf16, #tpu.memory_space<vmem>>, vector<128x128xbf16>
    %cst_8 = arith.constant dense<0.000000e+00> : vector<16x128xf32>
    %10 = tpu.matmul %8, %9, %cst_8 {dimension_numbers = #tpu.dot_dimension_numbers<[1], [0], [0], [1], [0, 0, 1, 1], [], []>} : vector<16x128xbf16>, vector<128x128xbf16>, vector<16x128xf32> -> vector<16x128xf32>
    %c0_9 = arith.constant 0 : index
    %c0_10 = arith.constant 0 : index
    %11 = vector.load %arg5[%c0_9, %c0_10] : memref<1x128xf32, #tpu.memory_space<vmem>>, vector<1x128xf32>
    %12 = vector.broadcast %11 : vector<1x128xf32> to vector<16x128xf32>
    %13 = arith.addf %10, %12 : vector<16x128xf32>
    %14 = arith.truncf %13 : vector<16x128xf32> to vector<16x128xbf16>
    %c0_11 = arith.constant 0 : index
    %c0_12 = arith.constant 0 : index
    %15 = vector.load %arg6[%c0_11, %c0_12] : memref<16x128xbf16, #tpu.memory_space<vmem>>, vector<16x128xbf16>
    tpu.vector_store %arg6[%c0_11, %c0_12], %14 {strides = array<i32>} : memref<16x128xbf16, #tpu.memory_space<vmem>>, vector<16x128xbf16>,
    return
  }
  func.func @transform_0(%arg0: i32) -> (i32, i32) {
    %c0_i32 = arith.constant 0 : i32
    %c0_i32_0 = arith.constant 0 : i32
    return %arg0, %c0_i32 : i32, i32
  }
  func.func @transform_1(%arg0: i32) -> (i32, i32) {
    %c0_i32 = arith.constant 0 : i32
    %c0_i32_0 = arith.constant 0 : i32
    %c0_i32_1 = arith.constant 0 : i32
    return %c0_i32, %c0_i32_0 : i32, i32
  }
  func.func @transform_2(%arg0: i32) -> (i32, i32) {
    %c0_i32 = arith.constant 0 : i32
    %c0_i32_0 = arith.constant 0 : i32
    %c0_i32_1 = arith.constant 0 : i32
    return %c0_i32, %c0_i32_0 : i32, i32
  }
  func.func @transform_3(%arg0: i32) -> (i32, i32) {
    %c0_i32 = arith.constant 0 : i32
    %c0_i32_0 = arith.constant 0 : i32
    %c0_i32_1 = arith.constant 0 : i32
    return %c0_i32, %c0_i32_0 : i32, i32
  }
  func.func @transform_4(%arg0: i32) -> (i32, i32) {
    %c0_i32 = arith.constant 0 : i32
    %c0_i32_0 = arith.constant 0 : i32
    %c0_i32_1 = arith.constant 0 : i32
    return %c0_i32, %c0_i32_0 : i32, i32
  }
  func.func @transform_5(%arg0: i32) -> (i32, i32) {
    %c0_i32 = arith.constant 0 : i32
    %c0_i32_0 = arith.constant 0 : i32
    return %arg0, %c0_i32 : i32, i32
  }
}

</mosaic_0001>

<bundles_post_ra>
// kernel: tpu_custom_call.1
= control target key start
LH: loop header
LB: loop body
LE: loop exit
PB: predicated region body
PF: predicated region fallthrough
CT: control target
= control target key end

     0   :  { %10 = vsyncpa [#allocation3], 0  ;;  %s460_s0 = inlined_call_operand.hbm [shape: bf16[16,32], index: 0, kind: input, shape index: {}]   ;;  %s461_s1 = inlined_call_operand.hbm [shape: bf16[32,128], index: 1, kind: input, shape index: {}]   ;;  %s462_s2 = inlined_call_operand.vmem [shape: f32[1,128], index: 2, kind: input, shape index: {}]   ;;  %s463_s3 = inlined_call_operand.hbm [shape: bf16[128,128], index: 3, kind: input, shape index: {}]   ;;  %s464_s4 = inlined_call_operand.vmem [shape: f32[1,128], index: 4, kind: input, shape index: {}]   ;;  %s465_s5 = inlined_call_operand.hbm [shape: bf16[16,128], index: 5, kind: output, shape index: {}]  }
   0x1   :  { %11 = vsyncpa [#allocation6], 0 }
   0x2   :  { %12 = vsyncpa [#allocation4], 0  ;;  %s30_s20 = sshll.u32 %s461_s1, 4  ;;  %s394_s21 = smov [#allocation5]   ;;  %s31_s20 = int_to_ptr.hbm [resolvable:$true] %s30_s20 }
   0x3   :  { %s32_s22 = sshll.u32 %s394_s21, 4  ;;  %s17_s25 = sshll.u32 %s460_s0, 4  ;;  %s33_s22 = int_to_ptr.vmem [resolvable:$true] %s32_s22  ;;  %s18_s25 = int_to_ptr.hbm [resolvable:$true] %s17_s25 }
   0x4   :  { %s395_s26 = smov 64   ;;  %s396_s27 = smov 4  }
   0x5   :  { %38 = dma.hbm_to_vmem [thread:$0]  %s31_s20, 256, %s33_s22, [#allocation6], %s395_s26, %s395_s26, %s396_s27  }
   0x6   :  { %s397_s28 = smov [#allocation2]   ;;  %s45_s1 = sshll.u32 %s463_s3, 4  ;;  %s46_s1 = int_to_ptr.hbm [resolvable:$true] %s45_s1 }
   0x7   :  { %s19_s29 = sshll.u32 %s397_s28, 4  ;;  %s398_s0 = smov [#allocation7]   ;;  %s20_s29 = int_to_ptr.vmem [resolvable:$true] %s19_s29 }
   0x8   :  { %25 = dma.hbm_to_vmem [thread:$0]  %s18_s25, 128, %s20_s29, [#allocation3], %s395_s26, %s395_s26, %s396_s27  }
   0x9   :  { %s47_s7 = sshll.u32 %s398_s0, 4  ;;  %s48_s7 = int_to_ptr.vmem [resolvable:$true] %s47_s7 }
   0xa   :  { %53 = dma.hbm_to_vmem [thread:$0]  %s46_s1, 1024, %s48_s7, [#allocation6], %s395_s26, %s395_s26, %s396_s27  }
   0xb   :  { %388 = dma.done.wait [#allocation3], 128  }
   0xc   :  { %389 = vsyncadd [#allocation3], 4294967168 }
   0xd   :  { %390 = dma.done.wait [#allocation6], 1280  }
   0xe   :  { %391 = vsyncadd [#allocation6], 4294966016  ;;  %v270_v0 = vld [vmem:[#allocation5 + $0x8] sm:$0xff]  ;;  %v269_v2 = vld [vmem:[#allocation5] sm:$0xff]  ;;  %vm96_vm0 = vcmask 261120   ;;  %s399_s11 = smov [#allocation8]  }
   0xf   :  { %v278_v1 = vld [vmem:[#allocation7 + $0x38] sm:$0xff]  ;;  %106 = vmatpush.bf16.msra.mxu0 %v270_v0  ;;  %v277_v3 = vld [vmem:[#allocation7 + $0x30] sm:$0xff]  ;;  %v268_v4 = vld [vmem:[#allocation2] sm:$0xff]  ;;  %s207_s12 = sshll.u32 %s399_s11, 4  ;;  %s209_s15 = sshll.u32 %s465_s5, 4  ;;  %s208_s12 = int_to_ptr.vmem [resolvable:$true] %s207_s12  ;;  %s210_s15 = int_to_ptr.hbm [resolvable:$true] %s209_s15 }
  0x10   :  { %185 = vmatpush.bf16.msra.mxu1 %v278_v1  ;;  %v276_v5 = vld [vmem:[#allocation7 + $0x28] sm:$0xff]  ;;  %v275_v6 = vld [vmem:[#allocation7 + $0x20] sm:$0xff]  ;;  %v274_v7 = vld [vmem:[#allocation7 + $0x18] sm:$0xff] }
  0x11   :  { %v273_v8 = vld [vmem:[#allocation7 + $0x10] sm:$0xff]  ;;  %v272_v9 = vld [vmem:[#allocation7 + $0x8] sm:$0xff]  ;;  %v271_v10 = vld [vmem:[#allocation7] sm:$0xff] }
  0x12   :  { %v290_v12 = vld [vmem:[%s462_s2] ss:$0 sm:$0xff] }
  0x13   :  { %107 = vmatpush.bf16.msra.mxu0 %v269_v2  ;;  %v291_v20 = vld [vmem:[%s464_s4] ss:$0 sm:$0xff] }
  0x14   :  { %186 = vmatpush.bf16.msra.mxu1 %v277_v3 }
  0x16   :  { %235 = vmatmul.msk.bf16.vlgmr.msra.gmra.mxu0 %vm96_vm0, %v268_v4 }
  0x18   :  { %187 = vmatpush.bf16.msra.mxu1 %v276_v5 }
  0x1c   :  { %188 = vmatpush.bf16.msra.mxu1 %v275_v6 }
  0x20   :  { %189 = vmatpush.bf16.msra.mxu1 %v274_v7 }
  0x24   :  { %190 = vmatpush.bf16.msra.mxu1 %v273_v8 }
  0x28   :  { %191 = vmatpush.bf16.msra.mxu1 %v272_v9 }
  0x2c   :  { %192 = vmatpush.bf16.msra.mxu1 %v271_v10 }
  0x93   :  { %v109_v11 = vpop.f32.mrf.mxu0 }
  0x94   :  { %v110_v13 = vadd.f32 %v290_v12, %v109_v11 }
  0x96   :  { %v114_v16 = vmax.f32 %v110_v13, 0.0 }
  0x9b   :  { %v111_v14 = vpop.f32.mrf.mxu0 }
  0x9c   :  { %v112_v15 = vadd.f32 %v290_v12, %v111_v14 }
  0x9e   :  { %v115_v17 = vmax.f32 %v112_v15, 0.0 }
  0xa0   :  { %v116_v18 = vpack.c.bf16 %v115_v17, %v114_v16 }
  0xa2   :  { %193 = vmatmul.bf16.vlgmr.msra.gmra.mxu1 %v116_v18 }
 0x11f   :  { %v194_v19 = vpop.f32.mrf.mxu1 }
 0x120   :  { %v195_v22 = vadd.f32 %v291_v20, %v194_v19 }
 0x127   :  { %v196_v21 = vpop.f32.mrf.mxu1 }
 0x128   :  { %v197_v23 = vadd.f32 %v291_v20, %v196_v21 }
 0x12a   :  { %v282_v24 = vpack.c.bf16 %v197_v23, %v195_v22 }
 0x12c   :  { %283 = vst [vmem:[#allocation8] sm:$0xff] %v282_v24  }
 0x12d   :  { %215 = dma.vmem_to_hbm [thread:$0]  %s208_s12, 128, %s210_s15, [#allocation4], %s395_s26, %s395_s26, %s396_s27  }
 0x12e   :  { %392 = dma.done.wait [#allocation4], 128  }
 0x12f   :  { %393 = vsyncadd [#allocation4], 4294967168 }
 0x130   :  { %220 = vsyncpa [#allocation3], 1 }
 0x131   :  { %221 = vsyncpa [#allocation6], 1 }
 0x132   :  { %222 = vsyncpa [#allocation4], 1 }

</bundles_post_ra>
